<compile_context>
chip_gen: v7x
topology: tpu7x:2x2x1
jax: 0.10.0
libtpu: 0.0.40
codegen_flags: <defaults>
</compile_context>

<pallas_src>
import jax
import jax.numpy as jnp
from jax.experimental import pallas as pl
from jax.experimental.pallas import tpu as pltpu

INPUT_SIZE = 59       # fixed by the PyTorch module (Linear(59 + hidden, ...))
HIDDEN = 32
I2O_OUT = 90
OUT = 10
DROPOUT_P = 0.5
PACK_W = 128          # lane-dense packed width: hidden [0:32], logits [32:42]
XW = 64               # x augmented: [x(0:59) | ones(59) | zeros(60:64)]
NEG_BIG = -1e30       # softmax mask value for non-logit lanes


def rnn_seq_kernel(x_ref, mask_ref, h0_ref, wx_ref, wh_ref, woh_ref,
                   out_ref, h_scr):
    t = pl.program_id(0)

    @pl.when(t == 0)
    def _():
        h_scr[...] = h0_ref[...]

    x = x_ref[0]                 # (B, 64), ones column carries the bias
    h = h_scr[...]               # (B, 128), hidden in lanes [0:32], 0 elsewhere

    # z: folded hidden pre-activation in lanes [0:32], x/h contribution to the
    # folded logits in lanes [32:42] (bias included via the ones column).
    z = (jnp.dot(x, wx_ref[...], preferred_element_type=jnp.float32)
         + jnp.dot(h, wh_ref[...], preferred_element_type=jnp.float32))

    lane = jax.lax.broadcasted_iota(jnp.int32, z.shape, 1)
    is_hid = lane < HIDDEN
    is_log = jnp.logical_and(lane >= HIDDEN, lane < HIDDEN + OUT)

    th = jnp.tanh(z)                               # only hidden lanes used
    hidden = jnp.where(is_hid, th, 0.0)            # next-step h / Woh input

    # logits (lanes [32:42]) = z + tanh(hidden) @ Woh (rows 0:32 populated)
    logits = z + jnp.dot(hidden, woh_ref[...],
                         preferred_element_type=jnp.float32)
    logits = jnp.where(is_log, logits, jnp.float32(NEG_BIG))

    # softmax over the 10 logit lanes only (other lanes underflow to 0).
    m = jnp.max(logits, axis=-1, keepdims=True)
    e = jnp.exp(logits - m)
    probs = e * pl.reciprocal(jnp.sum(e, axis=-1, keepdims=True), approx=True)

    # dropout(p=0.5) after softmax: pre-scaled keep mask (keep / (1-p)).
    # TODO(synk): reproduces PyTorch's training-mode dropout semantics, not
    # its exact RNG stream.
    dropped = probs * mask_ref[0]

    # Single unmasked lane-dense store: [hidden | dropped softmax | zeros].
    out_ref[0] = jnp.where(is_hid, hidden, dropped)
    h_scr[...] = hidden


def make_params(key, hidden_size=HIDDEN):
    """PyTorch-Linear-style init, then fold & lane-pack the weights offline."""
    def linear(key, fan_in, fan_out):
        kw, kb = jax.random.split(key)
        bound = 1.0 / jnp.sqrt(fan_in)
        W = jax.random.uniform(kw, (fan_out, fan_in), jnp.float32, -bound, bound)
        b = jax.random.uniform(kb, (fan_out,), jnp.float32, -bound, bound)
        return W, b

    k = jax.random.split(key, 5)
    W_i2o, b_i2o = linear(k[0], INPUT_SIZE + hidden_size, I2O_OUT)
    W_i2h, b_i2h = linear(k[1], INPUT_SIZE + hidden_size, hidden_size)
    W_i2h2, b_i2h2 = linear(k[2], hidden_size, hidden_size)
    W_i2h3, b_i2h3 = linear(k[3], hidden_size, hidden_size)
    W_o2o, b_o2o = linear(k[4], I2O_OUT + hidden_size, OUT)

    # Split concatenated-input weights, pre-transpose to (in, out).
    Wx_i2o = W_i2o[:, :INPUT_SIZE].T
    Wh_i2o = W_i2o[:, INPUT_SIZE:].T
    Wx_i2h = W_i2h[:, :INPUT_SIZE].T
    Wh_i2h = W_i2h[:, INPUT_SIZE:].T
    W2, W3 = W_i2h2.T, W_i2h3.T
    Wo_o2o = W_o2o[:, :I2O_OUT].T
    Wh_o2o = W_o2o[:, I2O_OUT:].T

    # Fold i2h -> i2h2 -> i2h3 (exact in real arithmetic; no nonlinearity).
    W23 = W2 @ W3
    Wx_hid = Wx_i2h @ W23
    Wh_hid = Wh_i2h @ W23
    b_hid = (b_i2h @ W2 + b_i2h2) @ W3 + b_i2h3

    # Fold i2o into o2o (the 90-wide intermediate disappears).
    Wx_log = Wx_i2o @ Wo_o2o
    Wh_log = Wh_i2o @ Wo_o2o
    b_log = b_i2o @ Wo_o2o + b_o2o

    # Lane-aligned packing: hidden -> lanes [0:32], logits -> lanes [32:42].
    # Wx_pack row 59 holds the folded biases (x's ones column), rows 60:64 = 0.
    Wx_pack = jnp.zeros((XW, PACK_W), jnp.float32)
    Wx_pack = Wx_pack.at[:INPUT_SIZE, :HIDDEN].set(Wx_hid)
    Wx_pack = Wx_pack.at[:INPUT_SIZE, HIDDEN:HIDDEN + OUT].set(Wx_log)
    Wx_pack = Wx_pack.at[INPUT_SIZE, :HIDDEN].set(b_hid)
    Wx_pack = Wx_pack.at[INPUT_SIZE, HIDDEN:HIDDEN + OUT].set(b_log)

    # Wh_pack rows 0:32 act on the hidden lanes of the carried state.
    Wh_pack = jnp.zeros((PACK_W, PACK_W), jnp.float32)
    Wh_pack = Wh_pack.at[:HIDDEN, :HIDDEN].set(Wh_hid)
    Wh_pack = Wh_pack.at[:HIDDEN, HIDDEN:HIDDEN + OUT].set(Wh_log)

    # Woh_pack rows 0:32 map tanh(hidden) into the logit lanes.
    Woh_pack = jnp.zeros((PACK_W, PACK_W), jnp.float32)
    Woh_pack = Woh_pack.at[:HIDDEN, HIDDEN:HIDDEN + OUT].set(Wh_o2o)

    packed = (Wx_pack, Wh_pack, Woh_pack)
    raw = (W_i2o, b_i2o, W_i2h, b_i2h, W_i2h2, b_i2h2,
           W_i2h3, b_i2h3, W_o2o, b_o2o)
    return packed, raw


def rnn_forward_seq(packed, x_seq, h0, drop_mask):
    """Run T RNN-cell steps in a single pallas_call.

    x_seq: (T, B, 59), h0: (B, 32), drop_mask: (T, B, 10) pre-scaled keep mask.
    Returns (outputs (T, B, 10), hiddens (T, B, 32)).
    """
    Wx_pack, Wh_pack, Woh_pack = packed
    T, B, _ = x_seq.shape

    # Pad batch (sublane) dim to a multiple of 8.
    Bp = max(8, ((B + 7) // 8) * 8)

    x_aug = jnp.zeros((T, Bp, XW), jnp.float32)
    x_aug = x_aug.at[:, :B, :INPUT_SIZE].set(x_seq)
    x_aug = x_aug.at[:, :B, INPUT_SIZE].set(1.0)          # bias column

    h0_pack = jnp.zeros((Bp, PACK_W), jnp.float32).at[:B, :HIDDEN].set(h0)

    mask_pack = jnp.zeros((T, Bp, PACK_W), jnp.float32)
    mask_pack = mask_pack.at[:, :B, HIDDEN:HIDDEN + OUT].set(drop_mask)

    const = lambda t: (0, 0)
    timed = lambda t: (t, 0, 0)

    cost = pl.CostEstimate(
        flops=T * Bp * 2 * (XW * PACK_W + 2 * PACK_W * PACK_W),
        transcendentals=T * Bp * 2 * PACK_W,
        bytes_accessed=4 * (x_aug.size + mask_pack.size + h0_pack.size
                            + Wx_pack.size + Wh_pack.size + Woh_pack.size
                            + T * Bp * PACK_W))

    packed_out = pl.pallas_call(
        rnn_seq_kernel,
        out_shape=jax.ShapeDtypeStruct((T, Bp, PACK_W), jnp.float32),
        grid_spec=pltpu.PrefetchScalarGridSpec(
            num_scalar_prefetch=0,
            grid=(T,),
            in_specs=[
                pl.BlockSpec((1, Bp, XW), timed),          # x (blocked over T)
                pl.BlockSpec((1, Bp, PACK_W), timed),      # dropout mask
                pl.BlockSpec((Bp, PACK_W), const),         # h0 (resident)
                pl.BlockSpec((XW, PACK_W), const),         # Wx+bias (resident)
                pl.BlockSpec((PACK_W, PACK_W), const),     # Wh (resident)
                pl.BlockSpec((PACK_W, PACK_W), const),     # Woh (resident)
            ],
            out_specs=pl.BlockSpec((1, Bp, PACK_W), timed),
            scratch_shapes=[pltpu.VMEM((Bp, PACK_W), jnp.float32)],  # h carry
        ),
        compiler_params=pltpu.CompilerParams(
            dimension_semantics=("arbitrary",),            # sequential h dep
            vmem_limit_bytes=32 * 1024 * 1024),
        cost_estimate=cost,
    )(x_aug, mask_pack, h0_pack, Wx_pack, Wh_pack, Woh_pack)

    outputs = packed_out[:, :B, HIDDEN:HIDDEN + OUT]
    hiddens = packed_out[:, :B, :HIDDEN]
    return outputs, hiddens


def rnn_reference_seq(raw, x_seq, h0, drop_mask):
    """Pure-JAX step-by-step re-implementation of the PyTorch forward."""
    (W_i2o, b_i2o, W_i2h, b_i2h, W_i2h2, b_i2h2,
     W_i2h3, b_i2h3, W_o2o, b_o2o) = raw
    h = h0
    outs, hids = [], []
    for t in range(x_seq.shape[0]):
        combined = jnp.concatenate([x_seq[t], h], axis=1)
        output = combined @ W_i2o.T + b_i2o
        hidden = combined @ W_i2h.T + b_i2h
        hidden = hidden @ W_i2h2.T + b_i2h2
        hidden = hidden @ W_i2h3.T + b_i2h3
        hidden = jnp.tanh(hidden)
        out_combined = jnp.concatenate([output, hidden], axis=1)
        logits = out_combined @ W_o2o.T + b_o2o
        probs = jax.nn.softmax(logits, axis=1)
        outs.append(probs * drop_mask[t])
        hids.append(hidden)
        h = hidden
    return jnp.stack(outs), jnp.stack(hids)


if __name__ == "__main__":
    key = jax.random.PRNGKey(0)
    k_params, k_x, k_h, k_drop = jax.random.split(key, 4)

    T, B = 8, 2
    packed, raw = make_params(k_params, HIDDEN)
    x_seq = jax.random.normal(k_x, (T, B, INPUT_SIZE), jnp.float32)
    # Module's initHidden() is zeros; a random h0 exercises the carry path.
    h0 = jax.random.normal(k_h, (B, HIDDEN), jnp.float32)

    # Training-mode dropout keep mask, pre-scaled by 1/(1-p).
    keep = jax.random.bernoulli(k_drop, 1.0 - DROPOUT_P, (T, B, OUT))
    drop_mask = keep.astype(jnp.float32) * (1.0 / (1.0 - DROPOUT_P))

    out, hid = jax.jit(rnn_forward_seq)(packed, x_seq, h0, drop_mask)
    jax.block_until_ready((out, hid))

    assert out.shape == (T, B, OUT) and hid.shape == (T, B, HIDDEN)

    # Validate folding + lane-packed kernel against the unfolded reference.
    ref_out, ref_hid = rnn_reference_seq(raw, x_seq, h0, drop_mask)
    assert jnp.allclose(hid, ref_hid, atol=1e-4, rtol=1e-3), "hidden mismatch"
    # Output tolerance is looser because of pl.reciprocal(approx=True).
    assert jnp.allclose(out, ref_out, atol=3e-3, rtol=1e-2), "output mismatch"

    print("KERNEL_OK")
</pallas_src>

<mosaic_0001>
module attributes {stable_mosaic.version = 11 : i64} {
  func.func @rnn_seq_kernel(%arg0: i32, %arg1: memref<1x8x64xf32, #tpu.memory_space<vmem>>, %arg2: memref<1x8x128xf32, #tpu.memory_space<vmem>>, %arg3: memref<8x128xf32, #tpu.memory_space<vmem>>, %arg4: memref<64x128xf32, #tpu.memory_space<vmem>>, %arg5: memref<128x128xf32, #tpu.memory_space<vmem>>, %arg6: memref<128x128xf32, #tpu.memory_space<vmem>>, %arg7: memref<1x8x128xf32, #tpu.memory_space<vmem>>, %arg8: memref<8x128xf32, #tpu.memory_space<vmem>>) attributes {dimension_semantics = [#tpu.dimension_semantics<arbitrary>], iteration_bounds = array<i64: 8>, scalar_prefetch = 0 : i64, scratch_operands = 1 : i64, tpu.core_type = #tpu.core_type<tc>, window_params = [{transform_indices = @transform_0, window_bounds = array<i64: 1, 8, 64>}, {transform_indices = @transform_1, window_bounds = array<i64: 1, 8, 128>}, {pipeline_mode = #tpu.pipeline_mode<synchronous>, transform_indices = @transform_2, window_bounds = array<i64: 8, 128>}, {pipeline_mode = #tpu.pipeline_mode<synchronous>, transform_indices = @transform_3, window_bounds = array<i64: 64, 128>}, {pipeline_mode = #tpu.pipeline_mode<synchronous>, transform_indices = @transform_4, window_bounds = array<i64: 128, 128>}, {pipeline_mode = #tpu.pipeline_mode<synchronous>, transform_indices = @transform_5, window_bounds = array<i64: 128, 128>}, {transform_indices = @transform_6, window_bounds = array<i64: 1, 8, 128>}]} {
    %c0_i32 = arith.constant 0 : i32
    %0 = arith.cmpi eq, %arg0, %c0_i32 : i32
    %1 = arith.extui %0 : i1 to i32
    %c0_i32_0 = arith.constant 0 : i32
    %2 = arith.cmpi ne, %1, %c0_i32_0 : i32
    scf.if %2 {
      %c0_26 = arith.constant 0 : index
      %c0_27 = arith.constant 0 : index
      %45 = vector.load %arg3[%c0_26, %c0_27] : memref<8x128xf32, #tpu.memory_space<vmem>>, vector<8x128xf32>
      %c0_28 = arith.constant 0 : index
      %c0_29 = arith.constant 0 : index
      %46 = vector.load %arg8[%c0_28, %c0_29] : memref<8x128xf32, #tpu.memory_space<vmem>>, vector<8x128xf32>
      tpu.vector_store %arg8[%c0_28, %c0_29], %45 {strides = array<i32>} : memref<8x128xf32, #tpu.memory_space<vmem>>, vector<8x128xf32>,
    } else {
    }
    %c0 = arith.constant 0 : index
    %c0_1 = arith.constant 0 : index
    %c0_2 = arith.constant 0 : index
    %3 = vector.load %arg1[%c0, %c0_1, %c0_2] : memref<1x8x64xf32, #tpu.memory_space<vmem>>, vector<1x8x64xf32>
    %4 = vector.shape_cast %3 : vector<1x8x64xf32> to vector<8x64xf32>
    %c0_3 = arith.constant 0 : index
    %c0_4 = arith.constant 0 : index
    %5 = vector.load %arg8[%c0_3, %c0_4] : memref<8x128xf32, #tpu.memory_space<vmem>>, vector<8x128xf32>
    %c0_5 = arith.constant 0 : index
    %c0_6 = arith.constant 0 : index
    %6 = vector.load %arg4[%c0_5, %c0_6] : memref<64x128xf32, #tpu.memory_space<vmem>>, vector<64x128xf32>
    %cst = arith.constant dense<0.000000e+00> : vector<8x128xf32>
    %7 = tpu.matmul %4, %6, %cst {dimension_numbers = #tpu.dot_dimension_numbers<[1], [0], [0], [1], [0, 0, 1, 1], [], []>} : vector<8x64xf32>, vector<64x128xf32>, vector<8x128xf32> -> vector<8x128xf32>
    %c0_7 = arith.constant 0 : index
    %c0_8 = arith.constant 0 : index
    %8 = vector.load %arg5[%c0_7, %c0_8] : memref<128x128xf32, #tpu.memory_space<vmem>>, vector<128x128xf32>
    %cst_9 = arith.constant dense<0.000000e+00> : vector<8x128xf32>
    %9 = tpu.matmul %5, %8, %cst_9 {dimension_numbers = #tpu.dot_dimension_numbers<[1], [0], [0], [1], [0, 0, 1, 1], [], []>} : vector<8x128xf32>, vector<128x128xf32>, vector<8x128xf32> -> vector<8x128xf32>
    %10 = arith.addf %7, %9 : vector<8x128xf32>
    %11 = tpu.iota {dimensions = array<i32: 1>} : vector<8x128xi32>
    %c32_i32 = arith.constant 32 : i32
    %12 = vector.broadcast %c32_i32 : i32 to vector<8x128xi32>
    %13 = arith.cmpi slt, %11, %12 : vector<8x128xi32>
    %c32_i32_10 = arith.constant 32 : i32
    %14 = vector.broadcast %c32_i32_10 : i32 to vector<8x128xi32>
    %15 = arith.cmpi sge, %11, %14 : vector<8x128xi32>
    %c42_i32 = arith.constant 42 : i32
    %16 = vector.broadcast %c42_i32 : i32 to vector<8x128xi32>
    %17 = arith.cmpi slt, %11, %16 : vector<8x128xi32>
    %18 = arith.andi %15, %17 : vector<8x128xi1>
    %19 = math.tanh %10 : vector<8x128xf32>
    %cst_11 = arith.constant 0.000000e+00 : f32
    %20 = vector.broadcast %cst_11 : f32 to vector<8x128xf32>
    %21 = arith.select %13, %19, %20 : vector<8x128xi1>, vector<8x128xf32>
    %c0_12 = arith.constant 0 : index
    %c0_13 = arith.constant 0 : index
    %22 = vector.load %arg6[%c0_12, %c0_13] : memref<128x128xf32, #tpu.memory_space<vmem>>, vector<128x128xf32>
    %cst_14 = arith.constant dense<0.000000e+00> : vector<8x128xf32>
    %23 = tpu.matmul %21, %22, %cst_14 {dimension_numbers = #tpu.dot_dimension_numbers<[1], [0], [0], [1], [0, 0, 1, 1], [], []>} : vector<8x128xf32>, vector<128x128xf32>, vector<8x128xf32> -> vector<8x128xf32>
    %24 = arith.addf %10, %23 : vector<8x128xf32>
    %cst_15 = arith.constant -1.000000e+30 : f32
    %25 = vector.broadcast %cst_15 : f32 to vector<8x128xf32>
    %26 = arith.select %18, %24, %25 : vector<8x128xi1>, vector<8x128xf32>
    %cst_16 = arith.constant dense<0xFF800000> : vector<8xf32>
    %27 = vector.multi_reduction <maximumf>, %26, %cst_16 [1] : vector<8x128xf32> to vector<8xf32>
    %28 = vector.shape_cast %27 : vector<8xf32> to vector<8x1xf32>
    %29 = vector.broadcast %28 : vector<8x1xf32> to vector<8x128xf32>
    %30 = arith.subf %26, %29 : vector<8x128xf32>
    %31 = math.exp %30 : vector<8x128xf32>
    %cst_17 = arith.constant dense<0.000000e+00> : vector<8xf32>
    %32 = vector.multi_reduction <add>, %31, %cst_17 [1] : vector<8x128xf32> to vector<8xf32>
    %33 = vector.shape_cast %32 : vector<8xf32> to vector<8x1xf32>
    %34 = tpu.reciprocal %33 {approx = true} : vector<8x1xf32> -> vector<8x1xf32>
    %35 = vector.broadcast %34 : vector<8x1xf32> to vector<8x128xf32>
    %36 = arith.mulf %31, %35 : vector<8x128xf32>
    %c0_18 = arith.constant 0 : index
    %c0_19 = arith.constant 0 : index
    %c0_20 = arith.constant 0 : index
    %37 = vector.load %arg2[%c0_18, %c0_19, %c0_20] : memref<1x8x128xf32, #tpu.memory_space<vmem>>, vector<1x8x128xf32>
    %38 = vector.shape_cast %37 : vector<1x8x128xf32> to vector<8x128xf32>
    %39 = arith.mulf %36, %38 : vector<8x128xf32>
    %40 = arith.select %13, %21, %39 : vector<8x128xi1>, vector<8x128xf32>
    %c0_21 = arith.constant 0 : index
    %c0_22 = arith.constant 0 : index
    %c0_23 = arith.constant 0 : index
    %41 = vector.load %arg7[%c0_21, %c0_22, %c0_23] : memref<1x8x128xf32, #tpu.memory_space<vmem>>, vector<1x8x128xf32>
    %42 = vector.shape_cast %41 : vector<1x8x128xf32> to vector<8x128xf32>
    %43 = vector.shape_cast %40 : vector<8x128xf32> to vector<1x8x128xf32>
    tpu.vector_store %arg7[%c0_21, %c0_22, %c0_23], %43 {strides = array<i32>} : memref<1x8x128xf32, #tpu.memory_space<vmem>>, vector<1x8x128xf32>,
    %c0_24 = arith.constant 0 : index
    %c0_25 = arith.constant 0 : index
    %44 = vector.load %arg8[%c0_24, %c0_25] : memref<8x128xf32, #tpu.memory_space<vmem>>, vector<8x128xf32>
    tpu.vector_store %arg8[%c0_24, %c0_25], %21 {strides = array<i32>} : memref<8x128xf32, #tpu.memory_space<vmem>>, vector<8x128xf32>,
    return
  }
  func.func @transform_0(%arg0: i32) -> (i32, i32, i32) {
    %c0_i32 = arith.constant 0 : i32
    %c0_i32_0 = arith.constant 0 : i32
    %c0_i32_1 = arith.constant 0 : i32
    return %arg0, %c0_i32, %c0_i32_0 : i32, i32, i32
  }
  func.func @transform_1(%arg0: i32) -> (i32, i32, i32) {
    %c0_i32 = arith.constant 0 : i32
    %c0_i32_0 = arith.constant 0 : i32
    %c0_i32_1 = arith.constant 0 : i32
    return %arg0, %c0_i32, %c0_i32_0 : i32, i32, i32
  }
  func.func @transform_2(%arg0: i32) -> (i32, i32) {
    %c0_i32 = arith.constant 0 : i32
    %c0_i32_0 = arith.constant 0 : i32
    %c0_i32_1 = arith.constant 0 : i32
    return %c0_i32, %c0_i32_0 : i32, i32
  }
  func.func @transform_3(%arg0: i32) -> (i32, i32) {
    %c0_i32 = arith.constant 0 : i32
    %c0_i32_0 = arith.constant 0 : i32
    %c0_i32_1 = arith.constant 0 : i32
    return %c0_i32, %c0_i32_0 : i32, i32
  }
  func.func @transform_4(%arg0: i32) -> (i32, i32) {
    %c0_i32 = arith.constant 0 : i32
    %c0_i32_0 = arith.constant 0 : i32
    %c0_i32_1 = arith.constant 0 : i32
    return %c0_i32, %c0_i32_0 : i32, i32
  }
  func.func @transform_5(%arg0: i32) -> (i32, i32) {
    %c0_i32 = arith.constant 0 : i32
    %c0_i32_0 = arith.constant 0 : i32
    %c0_i32_1 = arith.constant 0 : i32
    return %c0_i32, %c0_i32_0 : i32, i32
  }
  func.func @transform_6(%arg0: i32) -> (i32, i32, i32) {
    %c0_i32 = arith.constant 0 : i32
    %c0_i32_0 = arith.constant 0 : i32
    %c0_i32_1 = arith.constant 0 : i32
    return %arg0, %c0_i32, %c0_i32_0 : i32, i32, i32
  }
}

</mosaic_0001>

<bundles_post_ra>
// kernel: rnn_forward_seq.1
= control target key start
LH: loop header
LB: loop body
LE: loop exit
PB: predicated region body
PF: predicated region fallthrough
CT: control target
= control target key end

     0   :  { %s885_s21 = smov 0   ;;  %s1077_s0 = inlined_call_operand.vmem [shape: f32[8,8,64], index: 0, kind: input, shape index: {}]   ;;  %s1078_s1 = inlined_call_operand.vmem [shape: f32[8,8,128], index: 1, kind: input, shape index: {}]   ;;  %s1079_s2 = inlined_call_operand.vmem [shape: f32[8,128], index: 2, kind: input, shape index: {}]   ;;  %s1080_s3 = inlined_call_operand.vmem [shape: f32[64,128], index: 3, kind: input, shape index: {}]   ;;  %s1081_s4 = inlined_call_operand.vmem [shape: f32[128,128], index: 4, kind: input, shape index: {}]   ;;  %s1082_s5 = inlined_call_operand.vmem [shape: f32[128,128], index: 5, kind: input, shape index: {}]   ;;  %s1083_s6 = inlined_call_operand.vmem [shape: f32[8,8,128], index: 6, kind: output, shape index: {}]  }
   0x1 LB: > { %s615_s22 = sadd.s32 4294967295, %s845_s21   ;;  %p619_p0 = scmp.ge.s32.totalorder %s845_s21, 1  ;;  %s845_s21 = sphi %s885_s21, %s16_s21  }
   0x2   : > { %p220_p1 = scmp.lt.s32.totalorder %s845_s21, 9 }
   0x4   : > { %p221_p2 = pnand %p619_p0, %p220_p1 }
   0x5   : > { %p252_p3 = scmp.lt.s32.totalorder (!%p221_p2), %s615_s22, 7  ;;  %p623_p4 = scmp.ne.s32.totalorder (!%p221_p2), %s615_s22, 0 }
   0x6   : > { %224 = sbr.rel (%p221_p2) target bundleno = 825 (0x339), region = 44 }
   0xd   : > { %s253_s23 = scalar_select %p252_p3, %s615_s22, 7 }
   0xe   : > { %267 = sbr.rel (%p623_p4) target bundleno = 21 (0x15), region = 48  ;;  %v268_v0 = vld [vmem:[%s1079_s2] sm:$0xff] (!%p623_p4) }
   0xf   : > { %s893_s24 = sshll.u32 %s253_s23, 3  ;;  %269 = vst [vmem:[#allocation2] sm:$0xff] (!%p623_p4), %v268_v0 }
  0x10   : > { %s255_s27 = scalar_lea.vmem %s1077_s0, %s893_s24  ;;  %s259_s30 = scalar_lea.vmem %s1078_s1, %s893_s24 }
  0x11   : > { %s263_s9 = scalar_lea.vmem %s1083_s6, %s893_s24 }
  0x15 PF: > { %v280_v1 = vld [vmem:[%s1081_s4] sm:$0xff]  ;;  %v281_v2 = vld [vmem:[%s1081_s4 + $0x8] sm:$0xff]  ;;  %v282_v3 = vld [vmem:[%s1081_s4 + $0x10] sm:$0xff]  ;;  %v847_v4 = vmov 0.0|0.0   ;;  %vm848_vm0 = vmmov 0   ;;  %v849_v7 = vmov 0.0  }
  0x16   : > { %760 = vmatprep.subr.bf16.mxu0 %v847_v4  ;;  %v761_v5 = vpack.c.bf16 %v281_v2, %v280_v1  ;;  %v283_v6 = vld [vmem:[%s1081_s4 + $0x18] sm:$0xff]  ;;  %703 = vmatprep.mubr.msk.f32.mxu0 %vm848_vm0, %v849_v7  ;;  %v284_v9 = vld [vmem:[%s1081_s4 + $0x20] sm:$0xff]  ;;  %v285_v10 = vld [vmem:[%s1081_s4 + $0x28] sm:$0xff]  ;;  %vm366_vm1 = vcmask 523264  }
  0x17   : > { %796 = vmatprep.subr.bf16.mxu1 %v847_v4  ;;  %757 = vmatprep.mubr.msk.f32.mxu1 %vm848_vm0, %v849_v7  ;;  %v764_v8 = vpack.c.bf16 %v283_v6, %v282_v3  ;;  %v767_v11 = vpack.c.bf16 %v285_v10, %v284_v9  ;;  %v286_v12 = vld [vmem:[%s1081_s4 + $0x30] sm:$0xff]  ;;  %v287_v13 = vld [vmem:[%s1081_s4 + $0x38] sm:$0xff]  ;;  %v448_v14 = vld [vmem:[%s1082_s5] sm:$0xff]  ;;  %v440_v3 = vlaneseq }
  0x18   : > { %762 = vmatpush3.bf16.msra.mxu0 %v761_v5  ;;  %v449_v15 = vld [vmem:[%s1082_s5 + $0x8] sm:$0xff]  ;;  %v450_v16 = vld [vmem:[%s1082_s5 + $0x10] sm:$0xff]  ;;  %v451_v17 = vld [vmem:[%s1082_s5 + $0x18] sm:$0xff]  ;;  %v770_v19 = vpack.c.bf16 %v287_v13, %v286_v12 }
  0x19   : > { %763 = vmatprep.subr.bf16.mxu0 %v847_v4  ;;  %v797_v18 = vpack.c.bf16 %v449_v15, %v448_v14  ;;  %v288_v20 = vld [vmem:[%s1081_s4 + $0x40] sm:$0xff]  ;;  %v289_v21 = vld [vmem:[%s1081_s4 + $0x48] sm:$0xff]  ;;  %v800_v22 = vpack.c.bf16 %v451_v17, %v450_v16  ;;  %v290_v26 = vld [vmem:[%s1081_s4 + $0x50] sm:$0xff]  ;;  %v441_v5 = vand.u32 127, %v440_v3 }
  0x1a   : > { %v452_v23 = vld [vmem:[%s1082_s5 + $0x20] sm:$0xff]  ;;  %v453_v24 = vld [vmem:[%s1082_s5 + $0x28] sm:$0xff]  ;;  %v773_v25 = vpack.c.bf16 %v289_v21, %v288_v20  ;;  %v291_v27 = vld [vmem:[%s1081_s4 + $0x58] sm:$0xff] }
  0x1b   : > { %798 = vmatpush3.bf16.msra.mxu1 %v797_v18  ;;  %v803_v28 = vpack.c.bf16 %v453_v24, %v452_v23  ;;  %v454_v29 = vld [vmem:[%s1082_s5 + $0x30] sm:$0xff]  ;;  %v455_v30 = vld [vmem:[%s1082_s5 + $0x38] sm:$0xff]  ;;  %v776_v31 = vpack.c.bf16 %v291_v27, %v290_v26  ;;  %v292_v32 = vld [vmem:[%s1081_s4 + $0x60] sm:$0xff]  ;;  %vm442_vm2 = vcmp.lt.s32.totalorder %v441_v5, 32  ;;  %vm443_vm3 = vcmp.ge.s32.totalorder %v441_v5, 32 }
  0x1c   : > { %765 = vmatpush3.bf16.msra.mxu0 %v764_v8  ;;  %799 = vmatprep.subr.bf16.mxu1 %v847_v4  ;;  %v293_v33 = vld [vmem:[%s1081_s4 + $0x68] sm:$0xff]  ;;  %v806_v34 = vpack.c.bf16 %v455_v30, %v454_v29  ;;  %v456_v35 = vld [vmem:[%s1082_s5 + $0x40] sm:$0xff]  ;;  %v294_v38 = vld [vmem:[%s1081_s4 + $0x70] sm:$0xff]  ;;  %vm444_vm4 = vcmp.lt.s32.totalorder %v441_v5, 42 }
  0x1d   : > { %766 = vmatprep.subr.bf16.mxu0 %v847_v4  ;;  %v457_v36 = vld [vmem:[%s1082_s5 + $0x48] sm:$0xff]  ;;  %v779_v37 = vpack.c.bf16 %v293_v33, %v292_v32  ;;  %v295_v39 = vld [vmem:[%s1081_s4 + $0x78] sm:$0xff]  ;;  %v272_v42 = vld [vmem:[%s1080_s3] sm:$0xff] }
  0x1e   : > { %v809_v40 = vpack.c.bf16 %v457_v36, %v456_v35  ;;  %v782_v41 = vpack.c.bf16 %v295_v39, %v294_v38  ;;  %v273_v43 = vld [vmem:[%s1080_s3 + $0x8] sm:$0xff]  ;;  %v271_v44 = vld [vmem:[#allocation2] sm:$0xff]  ;;  %v274_v46 = vld [vmem:[%s1080_s3 + $0x10] sm:$0xff] }
  0x1f   : > { %801 = vmatpush3.bf16.msra.mxu1 %v800_v22  ;;  %v785_v45 = vpack.c.bf16 %v273_v43, %v272_v42  ;;  %v275_v47 = vld [vmem:[%s1080_s3 + $0x18] sm:$0xff]  ;;  %v276_v49 = vld [vmem:[%s1080_s3 + $0x20] sm:$0xff]  ;;  %v277_v50 = vld [vmem:[%s1080_s3 + $0x28] sm:$0xff] }
  0x20   : > { %768 = vmatpush3.bf16.msra.mxu0 %v767_v11  ;;  %802 = vmatprep.subr.bf16.mxu1 %v847_v4  ;;  %v788_v48 = vpack.c.bf16 %v275_v47, %v274_v46  ;;  %v791_v51 = vpack.c.bf16 %v277_v50, %v276_v49  ;;  %v278_v52 = vld [vmem:[%s1080_s3 + $0x30] sm:$0xff]  ;;  %v279_v53 = vld [vmem:[%s1080_s3 + $0x38] sm:$0xff]  ;;  %v270_v55 = vld [vmem:[%s255_s27] sm:$0xff] }
  0x21   : > { %769 = vmatprep.subr.bf16.mxu0 %v847_v4  ;;  %v794_v54 = vpack.c.bf16 %v279_v53, %v278_v52  ;;  %v458_v56 = vld [vmem:[%s1082_s5 + $0x50] sm:$0xff]  ;;  %v459_v57 = vld [vmem:[%s1082_s5 + $0x58] sm:$0xff]  ;;  %v460_v59 = vld [vmem:[%s1082_s5 + $0x60] sm:$0xff] }
  0x22   : > { %v812_v58 = vpack.c.bf16 %v459_v57, %v458_v56  ;;  %v461_v60 = vld [vmem:[%s1082_s5 + $0x68] sm:$0xff]  ;;  %v462_v62 = vld [vmem:[%s1082_s5 + $0x70] sm:$0xff]  ;;  %v463_v63 = vld [vmem:[%s1082_s5 + $0x78] sm:$0xff] }
  0x23   : > { %804 = vmatpush3.bf16.msra.mxu1 %v803_v28  ;;  %v815_v61 = vpack.c.bf16 %v461_v60, %v460_v59  ;;  %v818_v0 = vpack.c.bf16 %v463_v63, %v462_v62  ;;  %vm445_vm5 = vmand %vm443_vm3, %vm444_vm4  ;;  %v545_v17 = vld [vmem:[%s259_s30] sm:$0xff] }
  0x24   : > { %771 = vmatpush3.bf16.msra.mxu0 %v770_v19  ;;  %805 = vmatprep.subr.bf16.mxu1 %v847_v4 }
  0x25   : > { %772 = vmatprep.subr.bf16.mxu0 %v847_v4 }
  0x27   : > { %807 = vmatpush3.bf16.msra.mxu1 %v806_v34 }
  0x28   : > { %774 = vmatpush3.bf16.msra.mxu0 %v773_v25  ;;  %808 = vmatprep.subr.bf16.mxu1 %v847_v4 }
  0x29   : > { %775 = vmatprep.subr.bf16.mxu0 %v847_v4 }
  0x2b   : > { %810 = vmatpush3.bf16.msra.mxu1 %v809_v40 }
  0x2c   : > { %777 = vmatpush3.bf16.msra.mxu0 %v776_v31  ;;  %811 = vmatprep.subr.bf16.mxu1 %v847_v4 }
  0x2d   : > { %778 = vmatprep.subr.bf16.mxu0 %v847_v4 }
  0x2f   : > { %813 = vmatpush3.bf16.msra.mxu1 %v812_v58 }
  0x30   : > { %780 = vmatpush3.bf16.msra.mxu0 %v779_v37  ;;  %814 = vmatprep.subr.bf16.mxu1 %v847_v4 }
  0x31   : > { %781 = vmatprep.subr.bf16.mxu0 %v847_v4 }
  0x33   : > { %816 = vmatpush3.bf16.msra.mxu1 %v815_v61 }
  0x34   : > { %783 = vmatpush3.bf16.msra.mxu0 %v782_v41  ;;  %817 = vmatprep.subr.bf16.mxu1 %v847_v4 }
  0x35   : > { %784 = vmatprep.subr.bf16.mxu0 %v847_v4 }
  0x37   : > { %704 = vmatmul.mubr.f32.vlgmr.msra.gmra.mrb[0].mxu0 %v271_v44  ;;  %819 = vmatpush3.bf16.msra.mxu1 %v818_v0 }
  0x38   : > { %786 = vmatpush3.bf16.msra.mxu0 %v785_v45  ;;  %722 = vmatprep.mubr.msk.f32.mxu0 %vm848_vm0, %v849_v7 }
  0x39   : > { %787 = vmatprep.subr.bf16.mxu0 %v847_v4 }
  0x3c   : > { %789 = vmatpush3.bf16.msra.mxu0 %v788_v48 }
  0x3d   : > { %790 = vmatprep.subr.bf16.mxu0 %v847_v4 }
  0x40   : > { %792 = vmatpush3.bf16.msra.mxu0 %v791_v51 }
  0x41   : > { %793 = vmatprep.subr.bf16.mxu0 %v847_v4 }
  0x44   : > { %795 = vmatpush3.bf16.msra.mxu0 %v794_v54 }
  0x47   : > { %723 = vmatmul.mubr.msk.f32.vlgmr.msra.gmra.mrb[0].mxu0 %vm366_vm1, %v270_v55 }
 0x11a   : > { %v436_v1 = vpop.f32.mrb[0].mxu0 }
 0x11b   : > { %833 = vtanh.f32 %v436_v1  ;;  %v724_v2 = vpop.f32.mrb[1].mxu0 }
 0x125   : > { %v834_v6 = vpop.eup %833 }
 0x126   : > { %v447_v7 = vsel %vm442_vm2, %v834_v6, 0.0  ;;  %758 = vmatmul.mubr.msk.f32.vlgmr.msra.gmra.mrb[0].mxu1 %vm442_vm2, %v834_v6 }
 0x127   : > { %549 = vst [vmem:[#allocation2] sm:$0xff] %v447_v7 }
 0x1f9   : > { %v530_v8 = vpop.f32.mrb[0].mxu1 }
 0x1fa   : > { %v534_v9 = vadd.f32 %v530_v8, %v436_v1  ;;  %v759_v4 = vpop.f32.mrb[1].mxu1 }
 0x1fc   : > { %v535_v10 = vsel %vm445_vm5, %v534_v9, -1e+30 }
 0x1fd   : > { %536 = vmax.xlane.f32.xlu0 %v535_v10 }
 0x28a   : > { %v537_v11 = vpop.xlane.xlu0 %536 }
 0x28b   : > { %v538_v12 = vsub.f32 %v535_v10, %v537_v11 }
 0x28d   : > { %v539_v13 = vmul.f32 1.442695, %v538_v12 }
 0x28f   : > { %835 = vpow2.f32 %v539_v13 }
 0x299   : > { %v836_v14 = vpop.eup %835 }
 0x29a   : > { %541 = vadd.xlane.f32.xlu0 %v836_v14 }
 0x327   : > { %v542_v15 = vpop.xlane.xlu0 %541 }
 0x328   : > { %837 = vrcp.f32 %v542_v15 }
 0x332   : > { %v838_v16 = vpop.eup %837 }
 0x333   : > { %v544_v18 = vmul.f32 %v838_v16, %v836_v14 }
 0x335   : > { %v546_v19 = vmul.f32 %v545_v17, %v544_v18 }
 0x337   : > { %v547_v20 = vsel %vm442_vm2, %v834_v6, %v546_v19 }
 0x338   : > { %548 = vst [vmem:[%s263_s9] sm:$0xff] %v547_v20 }
 0x339 PF: > { %s16_s21 = sadd.s32 1, %s845_s21  }
 0x33a   : > { %p13_p5 = scmp.ge.s32.totalorder %s16_s21, 10  }
 0x33c   :  { %15 = sbr.rel (!%p13_p5) target bundleno = 1 (0x1), region = 81 }

</bundles_post_ra>
